<compile_context>
chip_gen: v7x
topology: tpu7x:2x2x1
jax: 0.10.0
libtpu: 0.0.40
codegen_flags: <defaults>
</compile_context>

<pallas_src>
import jax
import jax.numpy as jnp
from jax import lax
from jax.experimental import pallas as pl
from jax.experimental.pallas import tpu as pltpu


def dkt_kernel(qid_ref, embed_ref, att_ref, w_ih_ref, w_hh_ref, b_ref,
               w_out_ref, b_out_ref, out_ref):
    """Fused DKT forward: embed gather + lstm_input + LSTM recurrence + linear + sigmoid.

    Gate layout along the 4H axis is (i | f | o | g), with the g block pre-scaled by 2
    so that tanh(x) = 2*sigmoid(2x) - 1 folds into the single sigmoid launch.
    """
    T = out_ref.shape[0]
    H = w_hh_ref.shape[0]

    # Embedding row gather (question_id is a scalar in SMEM, table is tiny -> VMEM).
    q_row = embed_ref[pl.ds(qid_ref[0], 1), :]                        # (1, H)

    # lstm_input = q.repeat(T,1) + attempts.repeat(1,H)  -> (T, H)
    x = q_row + att_ref[...]                                          # (1,H)+(T,1)->(T,H)

    # Hoisted input projection: ONE (T,H)x(H,4H) matmul + bias, kept as a value.
    pre = (jnp.dot(x, w_ih_ref[...], preferred_element_type=jnp.float32)
           + b_ref[...])                                              # (T, 4H)

    h = jnp.zeros((1, H), jnp.float32)
    c = jnp.zeros((1, H), jnp.float32)
    hs = []

    # T is static and small -> fully unrolled; h/c stay in vregs across steps.
    for t in range(T):
        gates = pre[t:t + 1, :] + jnp.dot(h, w_hh_ref[...],
                                          preferred_element_type=jnp.float32)  # (1, 4H)
        sig = jax.nn.sigmoid(gates)                                   # single EUP launch
        i_g = sig[:, 0 * H:1 * H]
        f_g = sig[:, 1 * H:2 * H]
        o_g = sig[:, 2 * H:3 * H]
        g_g = 2.0 * sig[:, 3 * H:4 * H] - 1.0                         # tanh via sigmoid (VPU fma)
        c = f_g * c + i_g * g_g
        h = o_g * jnp.tanh(c)                                         # second EUP launch
        hs.append(h)

    h_all = jnp.concatenate(hs, axis=0)                               # (T, H), register-resident

    # logits = lstm_out @ W_out^T + b_out ; predictions = sigmoid(logits)
    logits = (jnp.dot(h_all, w_out_ref[...], preferred_element_type=jnp.float32)
              + b_out_ref[...])
    out_ref[...] = jax.nn.sigmoid(logits)


def prepare_params(params):
    """One-time weight prep (amortized across calls):
       * reorder PyTorch gate blocks (i,f,g,o) -> (i,f,o,g),
       * scale the g-gate block by 2 (tanh-via-sigmoid fold),
       * transpose for right-multiplication, fold the two LSTM biases."""
    embed, w_ih, w_hh, b_ih, b_hh, w_out, b_out = params
    H = embed.shape[1]

    def reorder_scale(m):      # leading axis is the 4H gate axis in (i|f|g|o) order
        return jnp.concatenate([m[:2 * H], m[3 * H:4 * H], 2.0 * m[2 * H:3 * H]], axis=0)

    w_ih_t = jnp.transpose(reorder_scale(w_ih.astype(jnp.float32)))          # (H, 4H)
    w_hh_t = jnp.transpose(reorder_scale(w_hh.astype(jnp.float32)))          # (H, 4H)
    bias = reorder_scale((b_ih + b_hh).astype(jnp.float32))[None, :]         # (1, 4H)
    w_out_t = jnp.transpose(w_out).astype(jnp.float32)                       # (H, K)
    b_out_2d = b_out[None, :].astype(jnp.float32)                            # (1, K)
    return (embed.astype(jnp.float32), w_ih_t, w_hh_t, bias, w_out_t, b_out_2d)


def dkt_forward(question_id, attempts, prepped):
    embed, w_ih_t, w_hh_t, bias, w_out_t, b_out_2d = prepped
    N, H = embed.shape
    K = w_out_t.shape[1]
    T = attempts.shape[0]

    # Clamp the id: VMEM refs have no runtime bounds check (silent OOB read otherwise).
    qid = jnp.clip(jnp.asarray(question_id, jnp.int32), 0, N - 1).reshape((1,))
    att = jnp.asarray(attempts, jnp.float32)[:, None]                        # (T, 1)

    vmem = pl.BlockSpec(memory_space=pltpu.MemorySpace.VMEM)
    smem = pl.BlockSpec(memory_space=pltpu.MemorySpace.SMEM)

    return pl.pallas_call(
        dkt_kernel,
        out_shape=jax.ShapeDtypeStruct((T, K), jnp.float32),
        in_specs=[smem, vmem, vmem, vmem, vmem, vmem, vmem, vmem],
        out_specs=vmem,
    )(qid, embed, att, w_ih_t, w_hh_t, bias, w_out_t, b_out_2d)


def dkt_reference(question_id, attempts, params):
    """Pure-JAX reference mirroring the PyTorch forward, for validation."""
    embed, w_ih, w_hh, b_ih, b_hh, w_out, b_out = params
    H = embed.shape[1]
    q = embed[question_id]                                        # (H,)
    a = attempts.astype(jnp.float32)[:, None]                     # (T,1)
    x = q[None, :] + a                                            # (T,H)

    def step(carry, x_t):
        h, c = carry
        gates = x_t @ w_ih.T + b_ih + h @ w_hh.T + b_hh
        i = jax.nn.sigmoid(gates[0 * H:1 * H])
        f = jax.nn.sigmoid(gates[1 * H:2 * H])
        g = jnp.tanh(gates[2 * H:3 * H])
        o = jax.nn.sigmoid(gates[3 * H:4 * H])
        c_new = f * c + i * g
        h_new = o * jnp.tanh(c_new)
        return (h_new, c_new), h_new

    (_, _), hs = lax.scan(step, (jnp.zeros(H), jnp.zeros(H)), x)
    logits = hs @ w_out.T + b_out
    return jax.nn.sigmoid(logits)


if __name__ == "__main__":
    num_questions = 10
    num_knowledge_points = 16
    hidden_dim = 32
    seq_len = 8          # len(attempts)

    key = jax.random.PRNGKey(0)
    keys = jax.random.split(key, 8)
    s = 1.0 / jnp.sqrt(hidden_dim)

    embed = jax.random.normal(keys[0], (num_questions, hidden_dim), jnp.float32)
    w_ih = jax.random.uniform(keys[1], (4 * hidden_dim, hidden_dim), jnp.float32, -s, s)
    w_hh = jax.random.uniform(keys[2], (4 * hidden_dim, hidden_dim), jnp.float32, -s, s)
    b_ih = jax.random.uniform(keys[3], (4 * hidden_dim,), jnp.float32, -s, s)
    b_hh = jax.random.uniform(keys[4], (4 * hidden_dim,), jnp.float32, -s, s)
    w_out = jax.random.uniform(keys[5], (num_knowledge_points, hidden_dim), jnp.float32, -s, s)
    b_out = jax.random.uniform(keys[6], (num_knowledge_points,), jnp.float32, -s, s)
    params = (embed, w_ih, w_hh, b_ih, b_hh, w_out, b_out)

    question_id = 3
    attempts = jax.random.bernoulli(keys[7], 0.5, (seq_len,)).astype(jnp.int32)

    prepped = jax.tree_util.tree_map(jax.block_until_ready, prepare_params(params))

    preds = dkt_forward(question_id, attempts, prepped)
    preds = jax.block_until_ready(preds)

    ref = jax.block_until_ready(dkt_reference(question_id, attempts, params))
    assert preds.shape == (seq_len, num_knowledge_points)
    assert jnp.allclose(preds, ref, rtol=1e-4, atol=1e-4)

    print("KERNEL_OK")
</pallas_src>

<mosaic_0001>
module attributes {stable_mosaic.version = 11 : i64} {
  func.func @dkt_kernel(%arg0: memref<1xi32, #tpu.memory_space<smem>>, %arg1: memref<10x32xf32, #tpu.memory_space<vmem>>, %arg2: memref<8x1xf32, #tpu.memory_space<vmem>>, %arg3: memref<32x128xf32, #tpu.memory_space<vmem>>, %arg4: memref<32x128xf32, #tpu.memory_space<vmem>>, %arg5: memref<1x128xf32, #tpu.memory_space<vmem>>, %arg6: memref<32x16xf32, #tpu.memory_space<vmem>>, %arg7: memref<1x16xf32, #tpu.memory_space<vmem>>, %arg8: memref<8x16xf32, #tpu.memory_space<vmem>>) attributes {dimension_semantics = [], scalar_prefetch = 0 : i64, scratch_operands = 0 : i64, tpu.core_type = #tpu.core_type<tc>} {
    %c0 = arith.constant 0 : index
    %0 = memref.load %arg0[%c0] : memref<1xi32, #tpu.memory_space<smem>>
    %1 = arith.index_cast %0 : i32 to index
    %c0_0 = arith.constant 0 : index
    %2 = vector.load %arg1[%1, %c0_0] : memref<10x32xf32, #tpu.memory_space<vmem>>, vector<1x32xf32>
    %c0_1 = arith.constant 0 : index
    %c0_2 = arith.constant 0 : index
    %3 = vector.load %arg2[%c0_1, %c0_2] : memref<8x1xf32, #tpu.memory_space<vmem>>, vector<8x1xf32>
    %4 = vector.broadcast %2 : vector<1x32xf32> to vector<8x32xf32>
    %5 = vector.broadcast %3 : vector<8x1xf32> to vector<8x32xf32>
    %6 = arith.addf %4, %5 : vector<8x32xf32>
    %c0_3 = arith.constant 0 : index
    %c0_4 = arith.constant 0 : index
    %7 = vector.load %arg3[%c0_3, %c0_4] : memref<32x128xf32, #tpu.memory_space<vmem>>, vector<32x128xf32>
    %cst = arith.constant dense<0.000000e+00> : vector<8x128xf32>
    %8 = tpu.matmul %6, %7, %cst {dimension_numbers = #tpu.dot_dimension_numbers<[1], [0], [0], [1], [0, 0, 1, 1], [], []>} : vector<8x32xf32>, vector<32x128xf32>, vector<8x128xf32> -> vector<8x128xf32>
    %c0_5 = arith.constant 0 : index
    %c0_6 = arith.constant 0 : index
    %9 = vector.load %arg5[%c0_5, %c0_6] : memref<1x128xf32, #tpu.memory_space<vmem>>, vector<1x128xf32>
    %10 = vector.broadcast %9 : vector<1x128xf32> to vector<8x128xf32>
    %11 = arith.addf %8, %10 : vector<8x128xf32>
    %cst_7 = arith.constant 0.000000e+00 : f32
    %12 = vector.broadcast %cst_7 : f32 to vector<1x32xf32>
    %cst_8 = arith.constant 0.000000e+00 : f32
    %13 = vector.broadcast %cst_8 : f32 to vector<1x32xf32>
    %14 = vector.extract_strided_slice %11 {offsets = [0, 0], sizes = [1, 128], strides = [1, 1]} : vector<8x128xf32> to vector<1x128xf32>
    %c0_9 = arith.constant 0 : index
    %c0_10 = arith.constant 0 : index
    %15 = vector.load %arg4[%c0_9, %c0_10] : memref<32x128xf32, #tpu.memory_space<vmem>>, vector<32x128xf32>
    %cst_11 = arith.constant dense<0.000000e+00> : vector<1x128xf32>
    %16 = tpu.matmul %12, %15, %cst_11 {dimension_numbers = #tpu.dot_dimension_numbers<[1], [0], [0], [1], [0, 0, 1, 1], [], []>} : vector<1x32xf32>, vector<32x128xf32>, vector<1x128xf32> -> vector<1x128xf32>
    %17 = arith.addf %14, %16 : vector<1x128xf32>
    %18 = arith.negf %17 : vector<1x128xf32>
    %19 = math.exp %18 : vector<1x128xf32>
    %cst_12 = arith.constant 1.000000e+00 : f32
    %20 = vector.broadcast %cst_12 : f32 to vector<1x128xf32>
    %21 = arith.addf %20, %19 : vector<1x128xf32>
    %22 = arith.divf %20, %21 : vector<1x128xf32>
    %23 = vector.extract_strided_slice %22 {offsets = [0, 0], sizes = [1, 32], strides = [1, 1]} : vector<1x128xf32> to vector<1x32xf32>
    %24 = vector.extract_strided_slice %22 {offsets = [0, 32], sizes = [1, 32], strides = [1, 1]} : vector<1x128xf32> to vector<1x32xf32>
    %25 = vector.extract_strided_slice %22 {offsets = [0, 64], sizes = [1, 32], strides = [1, 1]} : vector<1x128xf32> to vector<1x32xf32>
    %26 = vector.extract_strided_slice %22 {offsets = [0, 96], sizes = [1, 32], strides = [1, 1]} : vector<1x128xf32> to vector<1x32xf32>
    %cst_13 = arith.constant 2.000000e+00 : f32
    %27 = vector.broadcast %cst_13 : f32 to vector<1x32xf32>
    %28 = arith.mulf %27, %26 : vector<1x32xf32>
    %cst_14 = arith.constant 1.000000e+00 : f32
    %29 = vector.broadcast %cst_14 : f32 to vector<1x32xf32>
    %30 = arith.subf %28, %29 : vector<1x32xf32>
    %31 = arith.mulf %24, %13 : vector<1x32xf32>
    %32 = arith.mulf %23, %30 : vector<1x32xf32>
    %33 = arith.addf %31, %32 : vector<1x32xf32>
    %34 = math.tanh %33 : vector<1x32xf32>
    %35 = arith.mulf %25, %34 : vector<1x32xf32>
    %36 = vector.extract_strided_slice %11 {offsets = [1, 0], sizes = [1, 128], strides = [1, 1]} : vector<8x128xf32> to vector<1x128xf32>
    %c0_15 = arith.constant 0 : index
    %c0_16 = arith.constant 0 : index
    %37 = vector.load %arg4[%c0_15, %c0_16] : memref<32x128xf32, #tpu.memory_space<vmem>>, vector<32x128xf32>
    %cst_17 = arith.constant dense<0.000000e+00> : vector<1x128xf32>
    %38 = tpu.matmul %35, %37, %cst_17 {dimension_numbers = #tpu.dot_dimension_numbers<[1], [0], [0], [1], [0, 0, 1, 1], [], []>} : vector<1x32xf32>, vector<32x128xf32>, vector<1x128xf32> -> vector<1x128xf32>
    %39 = arith.addf %36, %38 : vector<1x128xf32>
    %40 = arith.negf %39 : vector<1x128xf32>
    %41 = math.exp %40 : vector<1x128xf32>
    %cst_18 = arith.constant 1.000000e+00 : f32
    %42 = vector.broadcast %cst_18 : f32 to vector<1x128xf32>
    %43 = arith.addf %42, %41 : vector<1x128xf32>
    %44 = arith.divf %42, %43 : vector<1x128xf32>
    %45 = vector.extract_strided_slice %44 {offsets = [0, 0], sizes = [1, 32], strides = [1, 1]} : vector<1x128xf32> to vector<1x32xf32>
    %46 = vector.extract_strided_slice %44 {offsets = [0, 32], sizes = [1, 32], strides = [1, 1]} : vector<1x128xf32> to vector<1x32xf32>
    %47 = vector.extract_strided_slice %44 {offsets = [0, 64], sizes = [1, 32], strides = [1, 1]} : vector<1x128xf32> to vector<1x32xf32>
    %48 = vector.extract_strided_slice %44 {offsets = [0, 96], sizes = [1, 32], strides = [1, 1]} : vector<1x128xf32> to vector<1x32xf32>
    %cst_19 = arith.constant 2.000000e+00 : f32
    %49 = vector.broadcast %cst_19 : f32 to vector<1x32xf32>
    %50 = arith.mulf %49, %48 : vector<1x32xf32>
    %cst_20 = arith.constant 1.000000e+00 : f32
    %51 = vector.broadcast %cst_20 : f32 to vector<1x32xf32>
    %52 = arith.subf %50, %51 : vector<1x32xf32>
    %53 = arith.mulf %46, %33 : vector<1x32xf32>
    %54 = arith.mulf %45, %52 : vector<1x32xf32>
    %55 = arith.addf %53, %54 : vector<1x32xf32>
    %56 = math.tanh %55 : vector<1x32xf32>
    %57 = arith.mulf %47, %56 : vector<1x32xf32>
    %58 = vector.extract_strided_slice %11 {offsets = [2, 0], sizes = [1, 128], strides = [1, 1]} : vector<8x128xf32> to vector<1x128xf32>
    %c0_21 = arith.constant 0 : index
    %c0_22 = arith.constant 0 : index
    %59 = vector.load %arg4[%c0_21, %c0_22] : memref<32x128xf32, #tpu.memory_space<vmem>>, vector<32x128xf32>
    %cst_23 = arith.constant dense<0.000000e+00> : vector<1x128xf32>
    %60 = tpu.matmul %57, %59, %cst_23 {dimension_numbers = #tpu.dot_dimension_numbers<[1], [0], [0], [1], [0, 0, 1, 1], [], []>} : vector<1x32xf32>, vector<32x128xf32>, vector<1x128xf32> -> vector<1x128xf32>
    %61 = arith.addf %58, %60 : vector<1x128xf32>
    %62 = arith.negf %61 : vector<1x128xf32>
    %63 = math.exp %62 : vector<1x128xf32>
    %cst_24 = arith.constant 1.000000e+00 : f32
    %64 = vector.broadcast %cst_24 : f32 to vector<1x128xf32>
    %65 = arith.addf %64, %63 : vector<1x128xf32>
    %66 = arith.divf %64, %65 : vector<1x128xf32>
    %67 = vector.extract_strided_slice %66 {offsets = [0, 0], sizes = [1, 32], strides = [1, 1]} : vector<1x128xf32> to vector<1x32xf32>
    %68 = vector.extract_strided_slice %66 {offsets = [0, 32], sizes = [1, 32], strides = [1, 1]} : vector<1x128xf32> to vector<1x32xf32>
    %69 = vector.extract_strided_slice %66 {offsets = [0, 64], sizes = [1, 32], strides = [1, 1]} : vector<1x128xf32> to vector<1x32xf32>
    %70 = vector.extract_strided_slice %66 {offsets = [0, 96], sizes = [1, 32], strides = [1, 1]} : vector<1x128xf32> to vector<1x32xf32>
    %cst_25 = arith.constant 2.000000e+00 : f32
    %71 = vector.broadcast %cst_25 : f32 to vector<1x32xf32>
    %72 = arith.mulf %71, %70 : vector<1x32xf32>
    %cst_26 = arith.constant 1.000000e+00 : f32
    %73 = vector.broadcast %cst_26 : f32 to vector<1x32xf32>
    %74 = arith.subf %72, %73 : vector<1x32xf32>
    %75 = arith.mulf %68, %55 : vector<1x32xf32>
    %76 = arith.mulf %67, %74 : vector<1x32xf32>
    %77 = arith.addf %75, %76 : vector<1x32xf32>
    %78 = math.tanh %77 : vector<1x32xf32>
    %79 = arith.mulf %69, %78 : vector<1x32xf32>
    %80 = vector.extract_strided_slice %11 {offsets = [3, 0], sizes = [1, 128], strides = [1, 1]} : vector<8x128xf32> to vector<1x128xf32>
    %c0_27 = arith.constant 0 : index
    %c0_28 = arith.constant 0 : index
    %81 = vector.load %arg4[%c0_27, %c0_28] : memref<32x128xf32, #tpu.memory_space<vmem>>, vector<32x128xf32>
    %cst_29 = arith.constant dense<0.000000e+00> : vector<1x128xf32>
    %82 = tpu.matmul %79, %81, %cst_29 {dimension_numbers = #tpu.dot_dimension_numbers<[1], [0], [0], [1], [0, 0, 1, 1], [], []>} : vector<1x32xf32>, vector<32x128xf32>, vector<1x128xf32> -> vector<1x128xf32>
    %83 = arith.addf %80, %82 : vector<1x128xf32>
    %84 = arith.negf %83 : vector<1x128xf32>
    %85 = math.exp %84 : vector<1x128xf32>
    %cst_30 = arith.constant 1.000000e+00 : f32
    %86 = vector.broadcast %cst_30 : f32 to vector<1x128xf32>
    %87 = arith.addf %86, %85 : vector<1x128xf32>
    %88 = arith.divf %86, %87 : vector<1x128xf32>
    %89 = vector.extract_strided_slice %88 {offsets = [0, 0], sizes = [1, 32], strides = [1, 1]} : vector<1x128xf32> to vector<1x32xf32>
    %90 = vector.extract_strided_slice %88 {offsets = [0, 32], sizes = [1, 32], strides = [1, 1]} : vector<1x128xf32> to vector<1x32xf32>
    %91 = vector.extract_strided_slice %88 {offsets = [0, 64], sizes = [1, 32], strides = [1, 1]} : vector<1x128xf32> to vector<1x32xf32>
    %92 = vector.extract_strided_slice %88 {offsets = [0, 96], sizes = [1, 32], strides = [1, 1]} : vector<1x128xf32> to vector<1x32xf32>
    %cst_31 = arith.constant 2.000000e+00 : f32
    %93 = vector.broadcast %cst_31 : f32 to vector<1x32xf32>
    %94 = arith.mulf %93, %92 : vector<1x32xf32>
    %cst_32 = arith.constant 1.000000e+00 : f32
    %95 = vector.broadcast %cst_32 : f32 to vector<1x32xf32>
    %96 = arith.subf %94, %95 : vector<1x32xf32>
    %97 = arith.mulf %90, %77 : vector<1x32xf32>
    %98 = arith.mulf %89, %96 : vector<1x32xf32>
    %99 = arith.addf %97, %98 : vector<1x32xf32>
    %100 = math.tanh %99 : vector<1x32xf32>
    %101 = arith.mulf %91, %100 : vector<1x32xf32>
    %102 = vector.extract_strided_slice %11 {offsets = [4, 0], sizes = [1, 128], strides = [1, 1]} : vector<8x128xf32> to vector<1x128xf32>
    %c0_33 = arith.constant 0 : index
    %c0_34 = arith.constant 0 : index
    %103 = vector.load %arg4[%c0_33, %c0_34] : memref<32x128xf32, #tpu.memory_space<vmem>>, vector<32x128xf32>
    %cst_35 = arith.constant dense<0.000000e+00> : vector<1x128xf32>
    %104 = tpu.matmul %101, %103, %cst_35 {dimension_numbers = #tpu.dot_dimension_numbers<[1], [0], [0], [1], [0, 0, 1, 1], [], []>} : vector<1x32xf32>, vector<32x128xf32>, vector<1x128xf32> -> vector<1x128xf32>
    %105 = arith.addf %102, %104 : vector<1x128xf32>
    %106 = arith.negf %105 : vector<1x128xf32>
    %107 = math.exp %106 : vector<1x128xf32>
    %cst_36 = arith.constant 1.000000e+00 : f32
    %108 = vector.broadcast %cst_36 : f32 to vector<1x128xf32>
    %109 = arith.addf %108, %107 : vector<1x128xf32>
    %110 = arith.divf %108, %109 : vector<1x128xf32>
    %111 = vector.extract_strided_slice %110 {offsets = [0, 0], sizes = [1, 32], strides = [1, 1]} : vector<1x128xf32> to vector<1x32xf32>
    %112 = vector.extract_strided_slice %110 {offsets = [0, 32], sizes = [1, 32], strides = [1, 1]} : vector<1x128xf32> to vector<1x32xf32>
    %113 = vector.extract_strided_slice %110 {offsets = [0, 64], sizes = [1, 32], strides = [1, 1]} : vector<1x128xf32> to vector<1x32xf32>
    %114 = vector.extract_strided_slice %110 {offsets = [0, 96], sizes = [1, 32], strides = [1, 1]} : vector<1x128xf32> to vector<1x32xf32>
    %cst_37 = arith.constant 2.000000e+00 : f32
    %115 = vector.broadcast %cst_37 : f32 to vector<1x32xf32>
    %116 = arith.mulf %115, %114 : vector<1x32xf32>
    %cst_38 = arith.constant 1.000000e+00 : f32
    %117 = vector.broadcast %cst_38 : f32 to vector<1x32xf32>
    %118 = arith.subf %116, %117 : vector<1x32xf32>
    %119 = arith.mulf %112, %99 : vector<1x32xf32>
    %120 = arith.mulf %111, %118 : vector<1x32xf32>
    %121 = arith.addf %119, %120 : vector<1x32xf32>
    %122 = math.tanh %121 : vector<1x32xf32>
    %123 = arith.mulf %113, %122 : vector<1x32xf32>
    %124 = vector.extract_strided_slice %11 {offsets = [5, 0], sizes = [1, 128], strides = [1, 1]} : vector<8x128xf32> to vector<1x128xf32>
    %c0_39 = arith.constant 0 : index
    %c0_40 = arith.constant 0 : index
    %125 = vector.load %arg4[%c0_39, %c0_40] : memref<32x128xf32, #tpu.memory_space<vmem>>, vector<32x128xf32>
    %cst_41 = arith.constant dense<0.000000e+00> : vector<1x128xf32>
    %126 = tpu.matmul %123, %125, %cst_41 {dimension_numbers = #tpu.dot_dimension_numbers<[1], [0], [0], [1], [0, 0, 1, 1], [], []>} : vector<1x32xf32>, vector<32x128xf32>, vector<1x128xf32> -> vector<1x128xf32>
    %127 = arith.addf %124, %126 : vector<1x128xf32>
    %128 = arith.negf %127 : vector<1x128xf32>
    %129 = math.exp %128 : vector<1x128xf32>
    %cst_42 = arith.constant 1.000000e+00 : f32
    %130 = vector.broadcast %cst_42 : f32 to vector<1x128xf32>
    %131 = arith.addf %130, %129 : vector<1x128xf32>
    %132 = arith.divf %130, %131 : vector<1x128xf32>
    %133 = vector.extract_strided_slice %132 {offsets = [0, 0], sizes = [1, 32], strides = [1, 1]} : vector<1x128xf32> to vector<1x32xf32>
    %134 = vector.extract_strided_slice %132 {offsets = [0, 32], sizes = [1, 32], strides = [1, 1]} : vector<1x128xf32> to vector<1x32xf32>
    %135 = vector.extract_strided_slice %132 {offsets = [0, 64], sizes = [1, 32], strides = [1, 1]} : vector<1x128xf32> to vector<1x32xf32>
    %136 = vector.extract_strided_slice %132 {offsets = [0, 96], sizes = [1, 32], strides = [1, 1]} : vector<1x128xf32> to vector<1x32xf32>
    %cst_43 = arith.constant 2.000000e+00 : f32
    %137 = vector.broadcast %cst_43 : f32 to vector<1x32xf32>
    %138 = arith.mulf %137, %136 : vector<1x32xf32>
    %cst_44 = arith.constant 1.000000e+00 : f32
    %139 = vector.broadcast %cst_44 : f32 to vector<1x32xf32>
    %140 = arith.subf %138, %139 : vector<1x32xf32>
    %141 = arith.mulf %134, %121 : vector<1x32xf32>
    %142 = arith.mulf %133, %140 : vector<1x32xf32>
    %143 = arith.addf %141, %142 : vector<1x32xf32>
    %144 = math.tanh %143 : vector<1x32xf32>
    %145 = arith.mulf %135, %144 : vector<1x32xf32>
    %146 = vector.extract_strided_slice %11 {offsets = [6, 0], sizes = [1, 128], strides = [1, 1]} : vector<8x128xf32> to vector<1x128xf32>
    %c0_45 = arith.constant 0 : index
    %c0_46 = arith.constant 0 : index
    %147 = vector.load %arg4[%c0_45, %c0_46] : memref<32x128xf32, #tpu.memory_space<vmem>>, vector<32x128xf32>
    %cst_47 = arith.constant dense<0.000000e+00> : vector<1x128xf32>
    %148 = tpu.matmul %145, %147, %cst_47 {dimension_numbers = #tpu.dot_dimension_numbers<[1], [0], [0], [1], [0, 0, 1, 1], [], []>} : vector<1x32xf32>, vector<32x128xf32>, vector<1x128xf32> -> vector<1x128xf32>
    %149 = arith.addf %146, %148 : vector<1x128xf32>
    %150 = arith.negf %149 : vector<1x128xf32>
    %151 = math.exp %150 : vector<1x128xf32>
    %cst_48 = arith.constant 1.000000e+00 : f32
    %152 = vector.broadcast %cst_48 : f32 to vector<1x128xf32>
    %153 = arith.addf %152, %151 : vector<1x128xf32>
    %154 = arith.divf %152, %153 : vector<1x128xf32>
    %155 = vector.extract_strided_slice %154 {offsets = [0, 0], sizes = [1, 32], strides = [1, 1]} : vector<1x128xf32> to vector<1x32xf32>
    %156 = vector.extract_strided_slice %154 {offsets = [0, 32], sizes = [1, 32], strides = [1, 1]} : vector<1x128xf32> to vector<1x32xf32>
    %157 = vector.extract_strided_slice %154 {offsets = [0, 64], sizes = [1, 32], strides = [1, 1]} : vector<1x128xf32> to vector<1x32xf32>
    %158 = vector.extract_strided_slice %154 {offsets = [0, 96], sizes = [1, 32], strides = [1, 1]} : vector<1x128xf32> to vector<1x32xf32>
    %cst_49 = arith.constant 2.000000e+00 : f32
    %159 = vector.broadcast %cst_49 : f32 to vector<1x32xf32>
    %160 = arith.mulf %159, %158 : vector<1x32xf32>
    %cst_50 = arith.constant 1.000000e+00 : f32
    %161 = vector.broadcast %cst_50 : f32 to vector<1x32xf32>
    %162 = arith.subf %160, %161 : vector<1x32xf32>
    %163 = arith.mulf %156, %143 : vector<1x32xf32>
    %164 = arith.mulf %155, %162 : vector<1x32xf32>
    %165 = arith.addf %163, %164 : vector<1x32xf32>
    %166 = math.tanh %165 : vector<1x32xf32>
    %167 = arith.mulf %157, %166 : vector<1x32xf32>
    %168 = vector.extract_strided_slice %11 {offsets = [7, 0], sizes = [1, 128], strides = [1, 1]} : vector<8x128xf32> to vector<1x128xf32>
    %c0_51 = arith.constant 0 : index
    %c0_52 = arith.constant 0 : index
    %169 = vector.load %arg4[%c0_51, %c0_52] : memref<32x128xf32, #tpu.memory_space<vmem>>, vector<32x128xf32>
    %cst_53 = arith.constant dense<0.000000e+00> : vector<1x128xf32>
    %170 = tpu.matmul %167, %169, %cst_53 {dimension_numbers = #tpu.dot_dimension_numbers<[1], [0], [0], [1], [0, 0, 1, 1], [], []>} : vector<1x32xf32>, vector<32x128xf32>, vector<1x128xf32> -> vector<1x128xf32>
    %171 = arith.addf %168, %170 : vector<1x128xf32>
    %172 = arith.negf %171 : vector<1x128xf32>
    %173 = math.exp %172 : vector<1x128xf32>
    %cst_54 = arith.constant 1.000000e+00 : f32
    %174 = vector.broadcast %cst_54 : f32 to vector<1x128xf32>
    %175 = arith.addf %174, %173 : vector<1x128xf32>
    %176 = arith.divf %174, %175 : vector<1x128xf32>
    %177 = vector.extract_strided_slice %176 {offsets = [0, 0], sizes = [1, 32], strides = [1, 1]} : vector<1x128xf32> to vector<1x32xf32>
    %178 = vector.extract_strided_slice %176 {offsets = [0, 32], sizes = [1, 32], strides = [1, 1]} : vector<1x128xf32> to vector<1x32xf32>
    %179 = vector.extract_strided_slice %176 {offsets = [0, 64], sizes = [1, 32], strides = [1, 1]} : vector<1x128xf32> to vector<1x32xf32>
    %180 = vector.extract_strided_slice %176 {offsets = [0, 96], sizes = [1, 32], strides = [1, 1]} : vector<1x128xf32> to vector<1x32xf32>
    %cst_55 = arith.constant 2.000000e+00 : f32
    %181 = vector.broadcast %cst_55 : f32 to vector<1x32xf32>
    %182 = arith.mulf %181, %180 : vector<1x32xf32>
    %cst_56 = arith.constant 1.000000e+00 : f32
    %183 = vector.broadcast %cst_56 : f32 to vector<1x32xf32>
    %184 = arith.subf %182, %183 : vector<1x32xf32>
    %185 = arith.mulf %178, %165 : vector<1x32xf32>
    %186 = arith.mulf %177, %184 : vector<1x32xf32>
    %187 = arith.addf %185, %186 : vector<1x32xf32>
    %188 = math.tanh %187 : vector<1x32xf32>
    %189 = arith.mulf %179, %188 : vector<1x32xf32>
    %190 = tpu.concatenate %35, %57, %79, %101, %123, %145, %167, %189 in 0 : vector<1x32xf32>, vector<1x32xf32>, vector<1x32xf32>, vector<1x32xf32>, vector<1x32xf32>, vector<1x32xf32>, vector<1x32xf32>, vector<1x32xf32> -> vector<8x32xf32>
    %c0_57 = arith.constant 0 : index
    %c0_58 = arith.constant 0 : index
    %191 = vector.load %arg6[%c0_57, %c0_58] : memref<32x16xf32, #tpu.memory_space<vmem>>, vector<32x16xf32>
    %cst_59 = arith.constant dense<0.000000e+00> : vector<8x16xf32>
    %192 = tpu.matmul %190, %191, %cst_59 {dimension_numbers = #tpu.dot_dimension_numbers<[1], [0], [0], [1], [0, 0, 1, 1], [], []>} : vector<8x32xf32>, vector<32x16xf32>, vector<8x16xf32> -> vector<8x16xf32>
    %c0_60 = arith.constant 0 : index
    %c0_61 = arith.constant 0 : index
    %193 = vector.load %arg7[%c0_60, %c0_61] : memref<1x16xf32, #tpu.memory_space<vmem>>, vector<1x16xf32>
    %194 = vector.broadcast %193 : vector<1x16xf32> to vector<8x16xf32>
    %195 = arith.addf %192, %194 : vector<8x16xf32>
    %196 = arith.negf %195 : vector<8x16xf32>
    %197 = math.exp %196 : vector<8x16xf32>
    %cst_62 = arith.constant 1.000000e+00 : f32
    %198 = vector.broadcast %cst_62 : f32 to vector<8x16xf32>
    %199 = arith.addf %198, %197 : vector<8x16xf32>
    %200 = arith.divf %198, %199 : vector<8x16xf32>
    %c0_63 = arith.constant 0 : index
    %c0_64 = arith.constant 0 : index
    %201 = vector.load %arg8[%c0_63, %c0_64] : memref<8x16xf32, #tpu.memory_space<vmem>>, vector<8x16xf32>
    tpu.vector_store %arg8[%c0_63, %c0_64], %200 {strides = array<i32>} : memref<8x16xf32, #tpu.memory_space<vmem>>, vector<8x16xf32>,
    return
  }
}

</mosaic_0001>

<bundles_post_ra>
// kernel: tpu_custom_call.1
= control target key start
LH: loop header
LB: loop body
LE: loop exit
PB: predicated region body
PF: predicated region fallthrough
CT: control target
= control target key end

     0   :  { %14 = vsyncpa [#allocation4], 0  ;;  %s1729_s0 = inlined_call_operand.<no memory space> [shape: s32[1], index: 0, kind: input, shape index: {}]   ;;  %s1730_s1 = inlined_call_operand.hbm [shape: f32[10,32], index: 1, kind: input, shape index: {}]   ;;  %s1731_s2 = inlined_call_operand.vmem [shape: f32[8,1], index: 2, kind: input, shape index: {}]   ;;  %s1732_s3 = inlined_call_operand.vmem [shape: f32[32,128], index: 3, kind: input, shape index: {}]   ;;  %s1733_s4 = inlined_call_operand.vmem [shape: f32[32,128], index: 4, kind: input, shape index: {}]   ;;  %s1734_s5 = inlined_call_operand.vmem [shape: f32[1,128], index: 5, kind: input, shape index: {}]   ;;  %s1735_s6 = inlined_call_operand.vmem [shape: f32[32,16], index: 6, kind: input, shape index: {}]   ;;  %s1736_s7 = inlined_call_operand.vmem [shape: f32[1,16], index: 7, kind: input, shape index: {}]   ;;  %s1737_s8 = inlined_call_operand.hbm [shape: f32[8,16], index: 8, kind: output, shape index: {}]  }
   0x1   :  { %15 = vsyncpa [#allocation5], 0  ;;  %s1486_s27 = smov [#allocation3]   ;;  %s1438_s9 = scalar_lea.hbm %s1730_s1, 256 }
   0x2   :  { %s23_s28 = sshll.u32 %s1486_s27, 4  ;;  %p1439_p0 = scmp.ne.s32.totalorder %s1730_s1, %s1438_s9  ;;  %s24_s28 = int_to_ptr.vmem [resolvable:$true] %s23_s28 }
   0x3   :  { %p1442_p1 = scmp.lt.u32.totalorder %s1438_s9, %s1730_s1 }
   0x5   :  { %p1444_p2 = pnand %p1442_p1, %p1439_p0 }
   0x7   :  { %1447 = shalt.err (!%p1444_p2)
}
   0x8   :  { %s1448_s14 = scalar_lea.vmem %s24_s28, 256  ;;  %p1453_p4 = scmp.lt.s32.totalorder %s24_s28, %s24_s28 }
   0x9   :  { %p1449_p3 = scmp.ne.s32.totalorder %s24_s28, %s1448_s14  ;;  %p1454_p5 = scmp.lt.s32.totalorder %s1448_s14, %s1448_s14 }
   0xb   :  { %p1455_p6 = por %p1454_p5, %p1453_p4 }
   0xd   :  { %p1456_p7 = pnand %p1455_p6, %p1449_p3 }
   0xf   :  { %1459 = shalt.err (!%p1456_p7)
}
  0x10   :  { %s1487_s15 = smov 128   ;;  %s1488_s16 = smov 8  }
  0x11   :  { %29 = dma.hbm_to_vmem [thread:$0]  %s1730_s1, 256, %s24_s28, [#allocation4], %s1487_s15, %s1487_s15, %s1488_s16  }
  0x12   :  { %1482 = dma.done.wait [#allocation4], 256  }
  0x13   :  { %1483 = vsyncadd [#allocation4], 4294967040  ;;  %v1489_v0 = vmov 0   ;;  %v1490_v1 = vmov 0.0|0.0   ;;  %v48_v2 = vld [vmem:[%s1731_s2] sm:$0xff]  ;;  %v60_v4 = vld [vmem:[%s1732_s3 + $0x8] sm:$0xff] }
  0x14   :  { %1385 = vset.pattern.permute.xlu0 %v1489_v0  ;;  %1315 = vmatprep.subr.bf16.mxu0 %v1490_v1  ;;  %v59_v3 = vld [vmem:[%s1732_s3] sm:$0xff]  ;;  %v145_v7 = vld [vmem:[%s1733_s4 + $0x8] sm:$0xff]  ;;  %v61_v8 = vld [vmem:[%s1732_s3 + $0x10] sm:$0xff]  ;;  %vm1491_vm0 = vmmov 0   ;;  %v1492_v12 = vmov 0.0   ;;  %s46_s13 = scalar_lea.vmem [#allocation3], %s1729_s0 }
  0x15   :  { %1321 = vmatprep.subr.bf16.mxu1 %v1490_v1  ;;  %55 = vperm.xlu0 %1385, %v48_v2   ;;  %v1316_v5 = vpack.c.bf16 %v60_v4, %v59_v3  ;;  %v144_v6 = vld [vmem:[%s1733_s4] sm:$0xff]  ;;  %v62_v10 = vld [vmem:[%s1732_s3 + $0x18] sm:$0xff]  ;;  %v146_v11 = vld [vmem:[%s1733_s4 + $0x10] sm:$0xff]  ;;  %vm70_vm1 = vcmask 261120   ;;  %s1493_s15 = smov 32   ;;  %vm1002_vm2 = vcmask 1040384  }
  0x16   :  { %v1573_v9 = vpack.c.bf16 %v145_v7, %v144_v6  ;;  %1213 = vmatprep.mubr.msk.f32.mxu0 %vm1491_vm0, %v1492_v12  ;;  %1224 = vmatprep.mubr.msk.f32.mxu1 %vm1491_vm0, %v1492_v12  ;;  %v1319_v13 = vpack.c.bf16 %v62_v10, %v61_v8  ;;  %v147_v14 = vld [vmem:[%s1733_s4 + $0x18] sm:$0xff]  ;;  %v1126_v16 = vld [vmem:[%s46_s13] ss:$0 sm:$0xff]  ;;  %vm1004_vm3 = vcmask 1041408   ;;  %vm1006_vm4 = vcmask 1042432  }
  0x17   :  { %1317 = vmatpush3.bf16.msra.mxu0 %v1316_v5  ;;  %v1590_v15 = vpack.c.bf16 %v147_v14, %v146_v11  ;;  %v1127_v21 = vld [vmem:[%s1734_s5] ss:$0 sm:$0xff]  ;;  %s1494_s5 = smov 64   ;;  %vm1008_vm5 = vcmask 1043456   ;;  %vm1010_vm6 = vcmask 1044480   ;;  %vm1012_vm7 = vcmask 1045504  }
  0x18   :  { %1323 = vmatpush3.bf16.msra.mxu1 %v1573_v9  ;;  %1318 = vmatprep.subr.bf16.mxu0 %v1490_v1  ;;  %vm1014_vm8 = vcmask 1046528   ;;  %vm1108_vm9 = vcmask 130048  }
  0x19   :  { %1324 = vmatprep.subr.bf16.mxu1 %v1490_v1 }
  0x1b   :  { %1320 = vmatpush3.bf16.msra.mxu0 %v1319_v13 }
  0x1c   :  { %1326 = vmatpush3.bf16.msra.mxu1 %v1590_v15  ;;  %1327 = vmatprep.subr.bf16.mxu0 %v1490_v1 }
  0x1d   :  { %1333 = vmatprep.subr.bf16.mxu1 %v1490_v1 }
  0x1f   :  { %1225 = vmatmul.mubr.f32.vlgmr.msra.gmra.mrb[0].mxu1 %v1492_v12 }
  0x20   :  { %1335 = vmatpush3.bf16.msra.mxu1 %v1573_v9  ;;  %1246 = vmatprep.mubr.msk.f32.mxu1 %vm1491_vm0, %v1492_v12 }
  0x21   :  { %1336 = vmatprep.subr.bf16.mxu1 %v1490_v1 }
  0x24   :  { %1338 = vmatpush3.bf16.msra.mxu1 %v1590_v15 }
  0x25   :  { %1345 = vmatprep.subr.bf16.mxu1 %v1490_v1 }
  0x94   :  { %v56_v17 = vpop.permute.xlu0 %55 }
  0x95   :  { %v58_v18 = vadd.f32 %v1126_v16, %v56_v17 }
  0x97   :  { %1214 = vmatmul.mubr.msk.f32.vlgmr.msra.gmra.mrb[0].mxu0 %vm70_vm1, %v58_v18 }
  0x98   :  { %1329 = vmatpush3.bf16.msra.mxu0 %v1573_v9  ;;  %1235 = vmatprep.mubr.msk.f32.mxu0 %vm1491_vm0, %v1492_v12 }
  0x99   :  { %1330 = vmatprep.subr.bf16.mxu0 %v1490_v1 }
  0x9c   :  { %1332 = vmatpush3.bf16.msra.mxu0 %v1590_v15 }
  0x9d   :  { %1339 = vmatprep.subr.bf16.mxu0 %v1490_v1 }
  0xf2   :  { %v217_v19 = vpop.f32.mrb[0].mxu1 }
  0xf3   :  { %v1226_v20 = vpop.f32.mrb[1].mxu1 }
 0x16a   :  { %v140_v22 = vpop.f32.mrb[0].mxu0 }
 0x16b   :  { %v1616_v23 = vadd.f32 %v1127_v21, %v140_v22  ;;  %v1215_v24 = vpop.f32.mrb[1].mxu0 }
 0x16d   :  { %v221_v25 = vadd.f32 %v217_v19, %v1616_v23 }
 0x16f   :  { %v1129_v26 = vmul.f32 -1.442695, %v221_v25 }
 0x171   :  { %1386 = vpow2.f32 %v1129_v26 }
 0x17b   :  { %v1387_v27 = vpop.eup %1386 }
 0x17c   :  { %v225_v28 = vadd.f32 1.0, %v1387_v27 }
 0x17e   :  { %1388 = vrcp.f32 %v225_v28 }
 0x188   :  { %v1389_v29 = vpop.eup %1388 }
 0x189   :  { %v228_v30 = vmul.f32 2.0, %v1389_v29  ;;  %v230_v34 = vmul.f32 0.0, %v1389_v29 }
 0x18b   :  { %v1130_v31 = vadd.f32 -1.0, %v228_v30 }
 0x18d   :  { %232 = vrot.lane.b32.xlu0 %v1130_v31, %s1493_s15 }
 0x1ff   :  { %v233_v32 = vpop.permute.xlu0 %232 }
 0x200   :  { %v235_v33 = vmul.f32 %v1389_v29, %v233_v32 }
 0x202   :  { %237 = vrot.lane.b32.xlu1 %v235_v33, %s1493_s15 }
 0x274   :  { %v238_v35 = vpop.permute.xlu1 %237 }
 0x275   :  { %v240_v36 = vadd.f32 %v238_v35, %v230_v34 }
 0x277   :  { %1390 = vtanh.f32 %v240_v36  ;;  %v335_v53 = vrot.slane %v240_v36, 7 }
 0x281   :  { %v1391_v37 = vpop.eup %1390 }
 0x282   :  { %243 = vrot.lane.b32.xlu1 %v1391_v37, %s1493_s15 }
 0x2f4   :  { %v244_v38 = vpop.permute.xlu1 %243 }
 0x2f5   :  { %v1622_v39 = vmul.f32 %v1389_v29, %v244_v38 }
 0x2f7   :  { %248 = vrot.lane.b32.xlu0 %v1622_v39, %s1494_s5 }
 0x369   :  { %v249_v40 = vpop.permute.xlu0 %248 }
 0x36a   :  { %1236 = vmatmul.mubr.msk.f32.vlgmr.msra.gmra.mrb[2].mxu0 %vm70_vm1, %v249_v40 }
 0x36b   :  { %1341 = vmatpush3.bf16.msra.mxu0 %v1573_v9  ;;  %1257 = vmatprep.mubr.msk.f32.mxu0 %vm1491_vm0, %v1492_v12 }
 0x36c   :  { %1342 = vmatprep.subr.bf16.mxu0 %v1490_v1 }
 0x36f   :  { %1344 = vmatpush3.bf16.msra.mxu0 %v1590_v15 }
 0x370   :  { %1351 = vmatprep.subr.bf16.mxu0 %v1490_v1 }
 0x43d   :  { %v318_v41 = vpop.f32.mrb[2].mxu0 }
 0x43e   :  { %v323_v42 = vrot.slane %v318_v41, 7  ;;  %v1237_v43 = vpop.f32.mrb[3].mxu0 }
 0x440   :  { %v325_v44 = vadd.f32 %v323_v42, %v1616_v23 }
 0x442   :  { %v1132_v45 = vmul.f32 -1.442695, %v325_v44 }
 0x444   :  { %1392 = vpow2.f32 %v1132_v45 }
 0x44e   :  { %v1393_v46 = vpop.eup %1392 }
 0x44f   :  { %v329_v47 = vadd.f32 1.0, %v1393_v46 }
 0x451   :  { %1394 = vrcp.f32 %v329_v47 }
 0x45b   :  { %v1395_v48 = vpop.eup %1394 }
 0x45c   :  { %v332_v49 = vmul.f32 2.0, %v1395_v48  ;;  %v337_v54 = vmul.f32 %v1395_v48, %v335_v53 }
 0x45e   :  { %v1133_v50 = vadd.f32 -1.0, %v332_v49 }
 0x460   :  { %339 = vrot.lane.b32.xlu1 %v1133_v50, %s1493_s15 }
 0x4d2   :  { %v340_v51 = vpop.permute.xlu1 %339 }
 0x4d3   :  { %v342_v52 = vmul.f32 %v1395_v48, %v340_v51 }
 0x4d5   :  { %344 = vrot.lane.b32.xlu0 %v342_v52, %s1493_s15 }
 0x547   :  { %v345_v55 = vpop.permute.xlu0 %344 }
 0x548   :  { %v347_v56 = vadd.f32 %v345_v55, %v337_v54 }
 0x54a   :  { %1396 = vtanh.f32 %v347_v56  ;;  %v443_v13 = vrot.slane %v347_v56, 7 }
 0x554   :  { %v1397_v57 = vpop.eup %1396 }
 0x555   :  { %350 = vrot.lane.b32.xlu1 %v1397_v57, %s1493_s15 }
 0x5c7   :  { %v351_v58 = vpop.permute.xlu1 %350 }
 0x5c8   :  { %v353_v59 = vmul.f32 %v1395_v48, %v351_v58 }
 0x5ca   :  { %v355_v60 = vrot.slane %v353_v59, 1  ;;  %v1003_v21 = vsel %vm1002_vm2, %v1622_v39, %v353_v59 }
 0x5cc   :  { %356 = vrot.lane.b32.xlu0 %v355_v60, %s1494_s5 }
 0x63e   :  { %v357_v61 = vpop.permute.xlu0 %356 }
 0x63f   :  { %1247 = vmatmul.mubr.msk.f32.vlgmr.msra.gmra.mrb[2].mxu1 %vm70_vm1, %v357_v61 }
 0x640   :  { %1347 = vmatpush3.bf16.msra.mxu1 %v1573_v9  ;;  %1268 = vmatprep.mubr.msk.f32.mxu1 %vm1491_vm0, %v1492_v12 }
 0x641   :  { %1348 = vmatprep.subr.bf16.mxu1 %v1490_v1 }
 0x644   :  { %1350 = vmatpush3.bf16.msra.mxu1 %v1590_v15 }
 0x645   :  { %1357 = vmatprep.subr.bf16.mxu1 %v1490_v1 }
 0x712   :  { %v426_v62 = vpop.f32.mrb[2].mxu1 }
 0x713   :  { %v431_v63 = vrot.slane %v426_v62, 6  ;;  %v1248_v0 = vpop.f32.mrb[3].mxu1 }
 0x715   :  { %v433_v2 = vadd.f32 %v431_v63, %v1616_v23 }
 0x717   :  { %v1135_v3 = vmul.f32 -1.442695, %v433_v2 }
 0x719   :  { %1398 = vpow2.f32 %v1135_v3 }
 0x723   :  { %v1399_v4 = vpop.eup %1398 }
 0x724   :  { %v437_v5 = vadd.f32 1.0, %v1399_v4 }
 0x726   :  { %1400 = vrcp.f32 %v437_v5 }
 0x730   :  { %v1401_v6 = vpop.eup %1400 }
 0x731   :  { %v440_v7 = vmul.f32 2.0, %v1401_v6  ;;  %v445_v14 = vmul.f32 %v1401_v6, %v443_v13 }
 0x733   :  { %v1136_v8 = vadd.f32 -1.0, %v440_v7 }
 0x735   :  { %447 = vrot.lane.b32.xlu1 %v1136_v8, %s1493_s15 }
 0x7a7   :  { %v448_v10 = vpop.permute.xlu1 %447 }
 0x7a8   :  { %v450_v11 = vmul.f32 %v1401_v6, %v448_v10 }
 0x7aa   :  { %452 = vrot.lane.b32.xlu0 %v450_v11, %s1493_s15 }
 0x81c   :  { %v453_v16 = vpop.permute.xlu0 %452 }
 0x81d   :  { %v455_v17 = vadd.f32 %v453_v16, %v445_v14 }
 0x81f   :  { %1402 = vtanh.f32 %v455_v17  ;;  %v551_v38 = vrot.slane %v455_v17, 7 }
 0x829   :  { %v1403_v18 = vpop.eup %1402 }
 0x82a   :  { %458 = vrot.lane.b32.xlu1 %v1403_v18, %s1493_s15 }
 0x89c   :  { %v459_v19 = vpop.permute.xlu1 %458 }
 0x89d   :  { %v461_v20 = vmul.f32 %v1401_v6, %v459_v19 }
 0x89f   :  { %v463_v22 = vrot.slane %v461_v20, 2  ;;  %v1005_v24 = vsel %vm1004_vm3, %v1003_v21, %v461_v20 }
 0x8a1   :  { %464 = vrot.lane.b32.xlu0 %v463_v22, %s1494_s5 }
 0x913   :  { %v465_v25 = vpop.permute.xlu0 %464 }
 0x914   :  { %1258 = vmatmul.mubr.msk.f32.vlgmr.msra.gmra.mrb[4].mxu0 %vm70_vm1, %v465_v25 }
 0x915   :  { %1353 = vmatpush3.bf16.msra.mxu0 %v1573_v9  ;;  %1279 = vmatprep.mubr.msk.f32.mxu0 %vm1491_vm0, %v1492_v12 }
 0x916   :  { %1354 = vmatprep.subr.bf16.mxu0 %v1490_v1 }
 0x919   :  { %1356 = vmatpush3.bf16.msra.mxu0 %v1590_v15 }
 0x91a   :  { %1363 = vmatprep.subr.bf16.mxu0 %v1490_v1 }
 0x9e7   :  { %v534_v26 = vpop.f32.mrb[4].mxu0 }
 0x9e8   :  { %v539_v27 = vrot.slane %v534_v26, 5  ;;  %v1259_v28 = vpop.f32.mrb[5].mxu0 }
 0x9ea   :  { %v541_v29 = vadd.f32 %v539_v27, %v1616_v23 }
 0x9ec   :  { %v1138_v30 = vmul.f32 -1.442695, %v541_v29 }
 0x9ee   :  { %1404 = vpow2.f32 %v1138_v30 }
 0x9f8   :  { %v1405_v31 = vpop.eup %1404 }
 0x9f9   :  { %v545_v32 = vadd.f32 1.0, %v1405_v31 }
 0x9fb   :  { %1406 = vrcp.f32 %v545_v32 }
 0xa05   :  { %v1407_v33 = vpop.eup %1406 }
 0xa06   :  { %v548_v34 = vmul.f32 2.0, %v1407_v33  ;;  %v553_v39 = vmul.f32 %v1407_v33, %v551_v38 }
 0xa08   :  { %v1139_v35 = vadd.f32 -1.0, %v548_v34 }
 0xa0a   :  { %555 = vrot.lane.b32.xlu1 %v1139_v35, %s1493_s15 }
 0xa7c   :  { %v556_v36 = vpop.permute.xlu1 %555 }
 0xa7d   :  { %v558_v37 = vmul.f32 %v1407_v33, %v556_v36 }
 0xa7f   :  { %560 = vrot.lane.b32.xlu0 %v558_v37, %s1493_s15 }
 0xaf1   :  { %v561_v40 = vpop.permute.xlu0 %560 }
 0xaf2   :  { %v563_v41 = vadd.f32 %v561_v40, %v553_v39 }
 0xaf4   :  { %1408 = vtanh.f32 %v563_v41  ;;  %v659_v60 = vrot.slane %v563_v41, 7 }
 0xafe   :  { %v1409_v42 = vpop.eup %1408 }
 0xaff   :  { %566 = vrot.lane.b32.xlu1 %v1409_v42, %s1493_s15 }
 0xb71   :  { %v567_v43 = vpop.permute.xlu1 %566 }
 0xb72   :  { %v569_v44 = vmul.f32 %v1407_v33, %v567_v43 }
 0xb74   :  { %v571_v45 = vrot.slane %v569_v44, 3  ;;  %v1007_v46 = vsel %vm1006_vm4, %v1005_v24, %v569_v44 }
 0xb76   :  { %572 = vrot.lane.b32.xlu0 %v571_v45, %s1494_s5 }
 0xbe8   :  { %v573_v47 = vpop.permute.xlu0 %572 }
 0xbe9   :  { %1269 = vmatmul.mubr.msk.f32.vlgmr.msra.gmra.mrb[4].mxu1 %vm70_vm1, %v573_v47 }
 0xbea   :  { %1359 = vmatpush3.bf16.msra.mxu1 %v1573_v9  ;;  %1290 = vmatprep.mubr.msk.f32.mxu1 %vm1491_vm0, %v1492_v12 }
 0xbeb   :  { %1360 = vmatprep.subr.bf16.mxu1 %v1490_v1 }
 0xbee   :  { %1362 = vmatpush3.bf16.msra.mxu1 %v1590_v15 }
 0xbef   :  { %1369 = vmatprep.subr.bf16.mxu1 %v1490_v1 }
 0xcbc   :  { %v642_v48 = vpop.f32.mrb[4].mxu1 }
 0xcbd   :  { %v647_v49 = vrot.slane %v642_v48, 4  ;;  %v1270_v50 = vpop.f32.mrb[5].mxu1 }
 0xcbf   :  { %v649_v51 = vadd.f32 %v647_v49, %v1616_v23 }
 0xcc1   :  { %v1141_v52 = vmul.f32 -1.442695, %v649_v51 }
 0xcc3   :  { %1410 = vpow2.f32 %v1141_v52 }
 0xccd   :  { %v1411_v53 = vpop.eup %1410 }
 0xcce   :  { %v653_v54 = vadd.f32 1.0, %v1411_v53 }
 0xcd0   :  { %1412 = vrcp.f32 %v653_v54 }
 0xcda   :  { %v1413_v55 = vpop.eup %1412 }
 0xcdb   :  { %v656_v56 = vmul.f32 2.0, %v1413_v55  ;;  %v661_v61 = vmul.f32 %v1413_v55, %v659_v60 }
 0xcdd   :  { %v1142_v57 = vadd.f32 -1.0, %v656_v56 }
 0xcdf   :  { %663 = vrot.lane.b32.xlu1 %v1142_v57, %s1493_s15 }
 0xd51   :  { %v664_v58 = vpop.permute.xlu1 %663 }
 0xd52   :  { %v666_v59 = vmul.f32 %v1413_v55, %v664_v58 }
 0xd54   :  { %668 = vrot.lane.b32.xlu0 %v666_v59, %s1493_s15 }
 0xdc6   :  { %v669_v62 = vpop.permute.xlu0 %668 }
 0xdc7   :  { %v671_v63 = vadd.f32 %v669_v62, %v661_v61 }
 0xdc9   :  { %1414 = vtanh.f32 %v671_v63 }
 0xdd3   :  { %v1415_v0 = vpop.eup %1414 }
 0xdd4   :  { %674 = vrot.lane.b32.xlu1 %v1415_v0, %s1493_s15 }
 0xe46   :  { %v675_v2 = vpop.permute.xlu1 %674 }
 0xe47   :  { %v677_v3 = vmul.f32 %v1413_v55, %v675_v2 }
 0xe49   :  { %v679_v4 = vrot.slane %v677_v3, 4  ;;  %v1009_v5 = vsel %vm1008_vm5, %v1007_v46, %v677_v3 }
 0xe4b   :  { %680 = vrot.lane.b32.xlu0 %v679_v4, %s1494_s5 }
 0xebd   :  { %v681_v6 = vpop.permute.xlu0 %680 }
 0xebe   :  { %1280 = vmatmul.mubr.msk.f32.vlgmr.msra.gmra.mrb[6].mxu0 %vm70_vm1, %v681_v6  ;;  %v1018_v6 = vld [vmem:[%s1735_s6 + $0x10] sm:$0xff] }
 0xebf   :  { %1365 = vmatpush3.bf16.msra.mxu0 %v1573_v9  ;;  %1301 = vmatprep.mubr.msk.f32.mxu0 %vm1491_vm0, %v1492_v12 }
 0xec0   :  { %1366 = vmatprep.subr.bf16.mxu0 %v1490_v1 }
 0xec3   :  { %1368 = vmatpush3.bf16.msra.mxu0 %v1590_v15  ;;  %v767_v15 = vrot.slane %v671_v63, 7 }
 0xf91   :  { %v750_v7 = vpop.f32.mrb[6].mxu0 }
 0xf92   :  { %v755_v8 = vrot.slane %v750_v7, 3  ;;  %v1281_v10 = vpop.f32.mrb[7].mxu0 }
 0xf94   :  { %v757_v11 = vadd.f32 %v755_v8, %v1616_v23  ;;  %v1019_v8 = vld [vmem:[%s1735_s6 + $0x18] sm:$0xff] }
 0xf95   :  { %v1373_v10 = vpack.c.bf16 %v1019_v8, %v1018_v6 }
 0xf96   :  { %v1144_v13 = vmul.f32 -1.442695, %v757_v11 }
 0xf98   :  { %1416 = vpow2.f32 %v1144_v13 }
 0xfa2   :  { %v1417_v14 = vpop.eup %1416 }
 0xfa3   :  { %v761_v16 = vadd.f32 1.0, %v1417_v14 }
 0xfa5   :  { %1418 = vrcp.f32 %v761_v16 }
 0xfaf   :  { %v1419_v17 = vpop.eup %1418 }
 0xfb0   :  { %v764_v18 = vmul.f32 2.0, %v1419_v17  ;;  %v769_v21 = vmul.f32 %v1419_v17, %v767_v15 }
 0xfb2   :  { %v1145_v9 = vadd.f32 -1.0, %v764_v18  ;;  %v1152_v18 = vld [vmem:[%s1736_s7] ss:$0 sm:$0xff] }
 0xfb4   :  { %771 = vrot.lane.b32.xlu1 %v1145_v9, %s1493_s15 }
0x1026   :  { %v772_v19 = vpop.permute.xlu1 %771 }
0x1027   :  { %v774_v20 = vmul.f32 %v1419_v17, %v772_v19 }
0x1029   :  { %776 = vrot.lane.b32.xlu0 %v774_v20, %s1493_s15 }
0x109b   :  { %v777_v22 = vpop.permute.xlu0 %776 }
0x109c   :  { %v779_v24 = vadd.f32 %v777_v22, %v769_v21 }
0x109e   :  { %1420 = vtanh.f32 %v779_v24 }
0x10a8   :  { %v1421_v25 = vpop.eup %1420 }
0x10a9   :  { %782 = vrot.lane.b32.xlu1 %v1421_v25, %s1493_s15 }
0x111b   :  { %v783_v26 = vpop.permute.xlu1 %782 }
0x111c   :  { %v785_v27 = vmul.f32 %v1419_v17, %v783_v26 }
0x111e   :  { %v787_v28 = vrot.slane %v785_v27, 5  ;;  %v1011_v29 = vsel %vm1010_vm6, %v1009_v5, %v785_v27  ;;  %v1017_v5 = vld [vmem:[%s1735_s6 + $0x8] sm:$0xff] }
0x1120   :  { %788 = vrot.lane.b32.xlu0 %v787_v28, %s1494_s5 }
0x1192   :  { %v789_v30 = vpop.permute.xlu0 %788 }
0x1193   :  { %1291 = vmatmul.mubr.msk.f32.vlgmr.msra.gmra.mrb[6].mxu1 %vm70_vm1, %v789_v30 }
0x1194   :  { %1312 = vmatprep.mubr.msk.f32.mxu1 %vm1491_vm0, %v1492_v12  ;;  %v875_v12 = vrot.slane %v779_v24, 7 }
0x1266   :  { %v858_v31 = vpop.f32.mrb[6].mxu1 }
0x1267   :  { %v863_v32 = vrot.slane %v858_v31, 2  ;;  %v1292_v33 = vpop.f32.mrb[7].mxu1 }
0x1269   :  { %v865_v34 = vadd.f32 %v863_v32, %v1616_v23 }
0x126b   :  { %v1147_v35 = vmul.f32 -1.442695, %v865_v34 }
0x126d   :  { %1422 = vpow2.f32 %v1147_v35 }
0x1277   :  { %v1423_v36 = vpop.eup %1422 }
0x1278   :  { %v869_v37 = vadd.f32 1.0, %v1423_v36 }
0x127a   :  { %1424 = vrcp.f32 %v869_v37 }
0x1284   :  { %v1425_v38 = vpop.eup %1424 }
0x1285   :  { %v872_v39 = vmul.f32 2.0, %v1425_v38  ;;  %v877_v43 = vmul.f32 %v1425_v38, %v875_v12 }
0x1287   :  { %v1148_v40 = vadd.f32 -1.0, %v872_v39 }
0x1289   :  { %879 = vrot.lane.b32.xlu1 %v1148_v40, %s1493_s15 }
0x12fb   :  { %v880_v41 = vpop.permute.xlu1 %879 }
0x12fc   :  { %v882_v42 = vmul.f32 %v1425_v38, %v880_v41 }
0x12fe   :  { %884 = vrot.lane.b32.xlu0 %v882_v42, %s1493_s15 }
0x1370   :  { %v885_v44 = vpop.permute.xlu0 %884 }
0x1371   :  { %v887_v45 = vadd.f32 %v885_v44, %v877_v43 }
0x1373   :  { %1426 = vtanh.f32 %v887_v45  ;;  %v983_v0 = vrot.slane %v887_v45, 7 }
0x137d   :  { %v1427_v46 = vpop.eup %1426 }
0x137e   :  { %890 = vrot.lane.b32.xlu1 %v1427_v46, %s1493_s15 }
0x13f0   :  { %v891_v47 = vpop.permute.xlu1 %890 }
0x13f1   :  { %v893_v48 = vmul.f32 %v1425_v38, %v891_v47 }
0x13f3   :  { %v895_v49 = vrot.slane %v893_v48, 6  ;;  %v1013_v50 = vsel %vm1012_vm7, %v1011_v29, %v893_v48 }
0x13f5   :  { %896 = vrot.lane.b32.xlu0 %v895_v49, %s1494_s5 }
0x1467   :  { %v897_v51 = vpop.permute.xlu0 %896 }
0x1468   :  { %1302 = vmatmul.mubr.msk.f32.vlgmr.msra.gmra.mrb[8].mxu0 %vm70_vm1, %v897_v51 }
0x153b   :  { %v966_v52 = vpop.f32.mrb[8].mxu0 }
0x153c   :  { %v971_v53 = vrot.slane %v966_v52, 1  ;;  %v1303_v54 = vpop.f32.mrb[9].mxu0 }
0x153e   :  { %v973_v55 = vadd.f32 %v971_v53, %v1616_v23  ;;  %v1016_v23 = vld [vmem:[%s1735_s6] sm:$0xff]  ;;  %s1495_s6 = smov [#allocation6]  }
0x153f   :  { %v1370_v7 = vpack.c.bf16 %v1017_v5, %v1016_v23  ;;  %s1116_s25 = sshll.u32 %s1495_s6, 4  ;;  %s1117_s25 = int_to_ptr.vmem [resolvable:$true] %s1116_s25 }
0x1540   :  { %v1150_v56 = vmul.f32 -1.442695, %v973_v55  ;;  %s1460_s26 = scalar_lea.vmem %s1117_s25, 128  ;;  %p1465_p9 = scmp.lt.s32.totalorder %s1117_s25, %s1117_s25 }
0x1541   :  { %1371 = vmatpush3.bf16.msra.mxu1 %v1370_v7  ;;  %p1461_p8 = scmp.ne.s32.totalorder %s1117_s25, %s1460_s26  ;;  %p1466_p10 = scmp.lt.s32.totalorder %s1460_s26, %s1460_s26 }
0x1542   :  { %1428 = vpow2.f32 %v1150_v56  ;;  %1372 = vmatprep.subr.bf16.mxu1 %v1490_v1 }
0x1543   :  { %p1467_p11 = por %p1466_p10, %p1465_p9 }
0x1545   :  { %1374 = vmatpush3.bf16.msra.mxu1 %v1373_v10  ;;  %p1468_p12 = pnand %p1467_p11, %p1461_p8 }
0x154c   :  { %v1429_v57 = vpop.eup %1428 }
0x154d   :  { %v977_v58 = vadd.f32 1.0, %v1429_v57 }
0x154f   :  { %1430 = vrcp.f32 %v977_v58 }
0x1559   :  { %v1431_v59 = vpop.eup %1430 }
0x155a   :  { %v980_v60 = vmul.f32 2.0, %v1431_v59  ;;  %v985_v2 = vmul.f32 %v1431_v59, %v983_v0 }
0x155c   :  { %v1151_v61 = vadd.f32 -1.0, %v980_v60 }
0x155e   :  { %987 = vrot.lane.b32.xlu1 %v1151_v61, %s1493_s15 }
0x15d0   :  { %v988_v62 = vpop.permute.xlu1 %987 }
0x15d1   :  { %v990_v63 = vmul.f32 %v1431_v59, %v988_v62 }
0x15d3   :  { %992 = vrot.lane.b32.xlu0 %v990_v63, %s1493_s15 }
0x1645   :  { %v993_v3 = vpop.permute.xlu0 %992 }
0x1646   :  { %v995_v4 = vadd.f32 %v993_v3, %v985_v2 }
0x1648   :  { %1432 = vtanh.f32 %v995_v4 }
0x1652   :  { %v1433_v11 = vpop.eup %1432 }
0x1653   :  { %998 = vrot.lane.b32.xlu1 %v1433_v11, %s1493_s15 }
0x16c5   :  { %v999_v13 = vpop.permute.xlu1 %998 }
0x16c6   :  { %v1001_v14 = vmul.f32 %v1431_v59, %v999_v13 }
0x16c8   :  { %v1015_v16 = vsel %vm1014_vm8, %v1013_v50, %v1001_v14 }
0x16c9   :  { %1028 = vrot.lane.b32.xlu0 %v1015_v16, %s1494_s5 }
0x173b   :  { %v1029_v17 = vpop.permute.xlu0 %1028 }
0x173c   :  { %1313 = vmatmul.mubr.msk.f32.vlgmr.msra.gmra.mrb[8].mxu1 %vm70_vm1, %v1029_v17 }
0x180f   :  { %v1098_v9 = vpop.f32.mrb[8].mxu1 }
0x1810   :  { %v1099_v19 = vadd.f32 %v1152_v18, %v1098_v9  ;;  %v1314_v1 = vpop.f32.mrb[9].mxu1 }
0x1812   :  { %v1154_v20 = vmul.f32 -1.442695, %v1099_v19 }
0x1814   :  { %1434 = vpow2.f32 %v1154_v20 }
0x181e   :  { %v1435_v15 = vpop.eup %1434 }
0x181f   :  { %v1105_v21 = vadd.f32 1.0, %v1435_v15 }
0x1821   :  { %1436 = vrcp.f32 %v1105_v21 }
0x182b   :  { %v1437_v22 = vpop.eup %1436 }
0x182c   :  { %1109 = vst.msk [vmem:[#allocation6] sm:$0xff] %vm1108_vm9, %v1437_v22 }
0x182d   :  { %1471 = shalt.err (!%p1468_p12)
}
0x182e   :  { %s1472_s28 = scalar_lea.hbm %s1737_s8, 128 }
0x182f   :  { %p1473_p13 = scmp.ne.s32.totalorder %s1737_s8, %s1472_s28  ;;  %p1476_p0 = scmp.lt.u32.totalorder %s1472_s28, %s1737_s8 }
0x1831   :  { %p1478_p1 = pnand %p1476_p0, %p1473_p13 }
0x1833   :  { %1481 = shalt.err (!%p1478_p1)
}
0x1834   :  { %1119 = dma.vmem_to_hbm [thread:$0]  %s1117_s25, 128, %s1737_s8, [#allocation5]  }
0x1835   :  { %1484 = dma.done.wait [#allocation5], 128  }
0x1836   :  { %1485 = vsyncadd [#allocation5], 4294967168 }
0x1837   :  { %1123 = vsyncpa [#allocation4], 1 }
0x1838   :  { %1124 = vsyncpa [#allocation5], 1 }

</bundles_post_ra>
